<compile_context>
chip_gen: v5e
topology: v5e:2x2
jax: 0.10.0
libtpu: 0.0.40
codegen_flags: <defaults>
</compile_context>

<pallas_src>
import jax
import jax.numpy as jnp
from jax.experimental import pallas as pl
from jax.experimental.pallas import tpu as pltpu


def _attn_pool_kernel(qs_ref, k_ref, wk_ref, bk_ref, wv_ref, bv_ref,
                      hmask_ref, sbc_ref, bias_ref, out_ref, attn_ref):
    B, seq, d_kin = k_ref.shape
    hdk = wk_ref.shape[1]
    hdv = wv_ref.shape[1]

    # Fused k/v projections on the collapsed (B*seq, d_kin) slab: one big-M
    # MXU matmul each (f32 accumulation regardless of operand dtype).
    kflat = k_ref[...].reshape(B * seq, d_kin)
    ks = jnp.dot(kflat, wk_ref[...], preferred_element_type=jnp.float32) + bk_ref[...]
    vs = jnp.dot(kflat, wv_ref[...], preferred_element_type=jnp.float32) + bv_ref[...]
    ks3 = ks.reshape(B, seq, hdk)    # (B, seq, H*d_k)
    vs3 = vs.reshape(B, seq, hdv)    # (B, seq, H*d_v)

    # Per-head scaled dot products, emitted directly in (B, H, seq) layout:
    # qhead[b,h,:] keeps only head h's d_k slice of qs (1/sqrt(d_k) is folded
    # into hmask), so one batched MXU matmul yields the logits — no head loop,
    # no lane-splitting reshape, no transpose.
    qhead = qs_ref[...] * hmask_ref[...]                      # (B,1,HDk)*(H,HDk)->(B,H,HDk)
    logits = jnp.einsum('bhk,bsk->bhs', qhead, ks3,
                        preferred_element_type=jnp.float32)   # (B, H, seq)
    logits = logits + bias_ref[...]                           # (B, 1, seq) lane-dense bias

    # Softmax over the sequence (lane) axis.
    m = jnp.max(logits, axis=-1, keepdims=True)
    p = jnp.exp(logits - m)
    attn = p / jnp.sum(p, axis=-1, keepdims=True)             # (B, H, seq)
    attn_ref[...] = attn

    # Pooling: seq-deep contraction on the MXU, then a tiny H-row masked reduce.
    cross = jnp.einsum('bhs,bsv->bhv', attn, vs3,
                       preferred_element_type=jnp.float32)    # (B, H, H*d_v)
    out_ref[...] = jnp.sum(cross * sbc_ref[...], axis=1, keepdims=True)  # (B,1,H*d_v)


def multihead_att_pool_forward(q, k, w_qs_w, w_qs_b, w_ks_w, w_ks_b,
                               w_vs_w, w_vs_b, n_head, mask=None,
                               batch_block=None, matmul_dtype=jnp.float32):
    """JAX/Pallas equivalent of MultiheadAttPoolLayer.forward (eval mode).

    q:       (bs, d_q_original) f32
    k:       (bs, l, d_k_original) f32
    w_*_w:   torch Linear weights, shape (n_head*d_k, d_in) f32
    w_*_b:   torch Linear biases, shape (n_head*d_k,) f32
    mask:    optional bool (bs, l); True = masked out
    matmul_dtype: dtype for the in-kernel projection matmul operands
                  (jnp.bfloat16 halves HBM traffic on v6e/v7x; accumulation
                  and all softmax/pooling math stay f32).
    returns: (output (bs, n_head*d_v), attn (n_head*bs, l))
    """
    bs, d_q = q.shape
    _, seq, d_kin = k.shape
    H = n_head
    d_k = w_qs_w.shape[0] // H
    d_v = w_vs_w.shape[0] // H
    hdk = H * d_k
    hdv = H * d_v
    inv_temp = 1.0 / (float(d_k) ** 0.5)

    # ---- wrapper-side glue (layout plumbing + hoisted q projection) ----
    qs_proj = (q.astype(jnp.float32) @ jnp.transpose(w_qs_w).astype(jnp.float32)
               + w_qs_b.astype(jnp.float32))                     # (bs, H*d_k)

    wk_t = jnp.transpose(w_ks_w).astype(matmul_dtype)            # (d_kin, H*d_k)
    wv_t = jnp.transpose(w_vs_w).astype(matmul_dtype)            # (d_kin, H*d_v)
    bk = jnp.reshape(w_ks_b, (1, hdk)).astype(jnp.float32)
    bv = jnp.reshape(w_vs_b, (1, hdv)).astype(jnp.float32)
    k_in = k.astype(matmul_dtype)

    heads = jnp.arange(H)
    # Head-selection mask with 1/sqrt(d_k) folded in, and head-broadcast
    # indicator: per-head dots/broadcasts become MXU matmuls / masked reduces.
    hmask = (heads[:, None] == (jnp.arange(hdk)[None, :] // d_k)
             ).astype(jnp.float32) * inv_temp                    # (H, H*d_k)
    sbc = (heads[:, None] == (jnp.arange(hdv)[None, :] // d_v)
           ).astype(jnp.float32)                                 # (H, H*d_v)

    if mask is None:
        att_bias = jnp.zeros((bs, 1, seq), jnp.float32)
    else:
        # -1e30 (not -inf): a fully-masked row gives a uniform distribution
        # instead of NaN — the only semantic difference vs the torch module.
        att_bias = jnp.where(mask, -1e30, 0.0).astype(jnp.float32).reshape(bs, 1, seq)

    # ---- batch blocking ----
    if batch_block is None:
        # Keep the double-buffered per-step footprint well under the smallest
        # scoped-VMEM budget (v7x: 64 MiB physical / 32 MiB default scoped).
        budget = 16 * 1024 * 1024
        per_elem = 4 * (seq * d_kin + hdk + seq            # streamed blocks
                        + 2 * seq * (hdk + hdv)            # ks/vs temporaries
                        + H * (hdk + seq + hdv) + hdv)     # logits/attn/cross/out
        batch_block = max(1, budget // (4 * per_elem))
    # Keep >=2 grid steps so v7x's two TensorCores both get work.
    max_block_for_two_steps = pl.cdiv(bs, 2) if bs > 1 else 1
    B = max(1, min(batch_block, bs, max_block_for_two_steps))
    n_steps = pl.cdiv(bs, B)
    bs_pad = n_steps * B

    def pad_b(x):
        if bs_pad == bs:
            return x
        pad = [(0, bs_pad - bs)] + [(0, 0)] * (x.ndim - 1)
        return jnp.pad(x, pad)

    qs3 = pad_b(qs_proj.reshape(bs, 1, hdk))
    k_in = pad_b(k_in)
    att_bias = pad_b(att_bias)

    out3, attn_bhs = pl.pallas_call(
        _attn_pool_kernel,
        out_shape=(
            jax.ShapeDtypeStruct((bs_pad, 1, hdv), jnp.float32),
            jax.ShapeDtypeStruct((bs_pad, H, seq), jnp.float32),
        ),
        grid_spec=pltpu.PrefetchScalarGridSpec(
            num_scalar_prefetch=0,
            grid=(n_steps,),
            in_specs=[
                pl.BlockSpec((B, 1, hdk), lambda i: (i, 0, 0)),      # qs (pre-projected)
                pl.BlockSpec((B, seq, d_kin), lambda i: (i, 0, 0)),  # k
                pl.BlockSpec((d_kin, hdk), lambda i: (0, 0)),        # Wk^T
                pl.BlockSpec((1, hdk), lambda i: (0, 0)),            # bk
                pl.BlockSpec((d_kin, hdv), lambda i: (0, 0)),        # Wv^T
                pl.BlockSpec((1, hdv), lambda i: (0, 0)),            # bv
                pl.BlockSpec((H, hdk), lambda i: (0, 0)),            # head mask (scaled)
                pl.BlockSpec((H, hdv), lambda i: (0, 0)),            # head broadcast
                pl.BlockSpec((B, 1, seq), lambda i: (i, 0, 0)),      # mask bias (lane-dense)
            ],
            out_specs=[
                pl.BlockSpec((B, 1, hdv), lambda i: (i, 0, 0)),      # pooled output
                pl.BlockSpec((B, H, seq), lambda i: (i, 0, 0)),      # attn, lane-dense in seq
            ],
        ),
        compiler_params=pltpu.CompilerParams(
            dimension_semantics=("parallel",),
        ),
    )(qs3, k_in, wk_t, bk, wv_t, bv, hmask, sbc, att_bias)

    output = out3[:bs, 0, :]
    # Torch layout: attn row index = h * bs + b (major-dim permute only).
    attn = jnp.transpose(attn_bhs[:bs], (1, 0, 2)).reshape(H * bs, seq)
    # TODO(synk): dropout (on attn and on output) is identity here (eval mode);
    # training-mode dropout needs pltpu.prng_seed / prng_random_bits in-kernel.
    return output, attn


def _reference(q, k, w_qs_w, w_qs_b, w_ks_w, w_ks_b, w_vs_w, w_vs_b, n_head, mask=None):
    """Pure-JAX port of the PyTorch forward for correctness checking."""
    bs, _ = q.shape
    _, l, _ = k.shape
    d_k = w_qs_w.shape[0] // n_head
    d_v = w_vs_w.shape[0] // n_head
    qs = (q @ w_qs_w.T + w_qs_b).reshape(bs, n_head, d_k)
    ks = (k @ w_ks_w.T + w_ks_b).reshape(bs, l, n_head, d_k)
    vs = (k @ w_vs_w.T + w_vs_b).reshape(bs, l, n_head, d_v)
    qs = jnp.transpose(qs, (1, 0, 2)).reshape(n_head * bs, d_k)
    ks = jnp.transpose(ks, (2, 0, 1, 3)).reshape(n_head * bs, l, d_k)
    vs = jnp.transpose(vs, (2, 0, 1, 3)).reshape(n_head * bs, l, d_v)
    attn = (qs[:, None, :] * ks).sum(-1) / (d_k ** 0.5)
    if mask is not None:
        attn = jnp.where(jnp.tile(mask, (n_head, 1)), -jnp.inf, attn)
    attn = jax.nn.softmax(attn, axis=1)
    out = (attn[:, :, None] * vs).sum(1)
    out = out.reshape(n_head, bs, d_v)
    out = jnp.transpose(out, (1, 0, 2)).reshape(bs, n_head * d_v)
    return out, attn


if __name__ == "__main__":
    d_q_orig, d_k_orig, n_head = 32, 32, 4
    d_k = d_k_orig // n_head

    def make_inputs(key, bs, seq):
        kq, kk, kwq, kwk, kwv, kbq, kbk, kbv = jax.random.split(key, 8)
        q = jax.random.normal(kq, (bs, d_q_orig), dtype=jnp.float32)
        k = jax.random.normal(kk, (bs, seq, d_k_orig), dtype=jnp.float32)
        std_q = (2.0 / (d_q_orig + d_k)) ** 0.5
        std_k = (2.0 / (d_k_orig + d_k)) ** 0.5
        w_qs_w = std_q * jax.random.normal(kwq, (n_head * d_k, d_q_orig), dtype=jnp.float32)
        w_ks_w = std_k * jax.random.normal(kwk, (n_head * d_k, d_k_orig), dtype=jnp.float32)
        w_vs_w = std_k * jax.random.normal(kwv, (n_head * d_k, d_k_orig), dtype=jnp.float32)
        bscale = 1.0 / (d_k_orig ** 0.5)
        w_qs_b = jax.random.uniform(kbq, (n_head * d_k,), minval=-bscale, maxval=bscale, dtype=jnp.float32)
        w_ks_b = jax.random.uniform(kbk, (n_head * d_k,), minval=-bscale, maxval=bscale, dtype=jnp.float32)
        w_vs_b = jax.random.uniform(kbv, (n_head * d_k,), minval=-bscale, maxval=bscale, dtype=jnp.float32)
        return q, k, (w_qs_w, w_qs_b, w_ks_w, w_ks_b, w_vs_w, w_vs_b)

    key = jax.random.PRNGKey(0)
    # (bs, seq, with_mask, matmul_dtype, atol, rtol)
    cases = [
        (2, 8, False, jnp.float32, 1e-3, 1e-3),
        (2, 8, True,  jnp.float32, 1e-3, 1e-3),
        (16, 8, True, jnp.float32, 1e-3, 1e-3),    # exercises batch block B > 1
        (5, 8, True,  jnp.float32, 1e-3, 1e-3),    # exercises batch padding
        (16, 8, False, jnp.bfloat16, 5e-2, 5e-2),  # bf16 matmul operands (v6e/v7x path)
    ]
    for idx, (bs, seq, with_mask, mdt, atol, rtol) in enumerate(cases):
        key, sub = jax.random.split(key)
        q, k, params = make_inputs(sub, bs, seq)
        if with_mask:
            lens = jnp.where(jnp.arange(bs) % 2 == 1, seq - 3, seq)
            mask = jnp.arange(seq)[None, :] >= lens[:, None]
        else:
            mask = None
        out, attn = multihead_att_pool_forward(q, k, *params, n_head,
                                               mask=mask, matmul_dtype=mdt)
        out, attn = jax.block_until_ready((out, attn))
        ref_out, ref_attn = _reference(q, k, *params, n_head, mask=mask)
        assert out.shape == (bs, n_head * d_k), f"bad output shape, case {idx}"
        assert attn.shape == (n_head * bs, seq), f"bad attn shape, case {idx}"
        assert jnp.allclose(out, ref_out, atol=atol, rtol=rtol), f"output mismatch, case {idx}"
        assert jnp.allclose(attn, ref_attn, atol=atol, rtol=rtol), f"attn mismatch, case {idx}"

    print("KERNEL_OK")
</pallas_src>

<mosaic_0001>
module attributes {stable_mosaic.version = 11 : i64} {
  func.func @_attn_pool_kernel(%arg0: i32, %arg1: memref<1x1x32xf32, #tpu.memory_space<vmem>>, %arg2: memref<1x8x32xf32, #tpu.memory_space<vmem>>, %arg3: memref<32x32xf32, #tpu.memory_space<vmem>>, %arg4: memref<1x32xf32, #tpu.memory_space<vmem>>, %arg5: memref<32x32xf32, #tpu.memory_space<vmem>>, %arg6: memref<1x32xf32, #tpu.memory_space<vmem>>, %arg7: memref<4x32xf32, #tpu.memory_space<vmem>>, %arg8: memref<4x32xf32, #tpu.memory_space<vmem>>, %arg9: memref<1x1x8xf32, #tpu.memory_space<vmem>>, %arg10: memref<1x1x32xf32, #tpu.memory_space<vmem>>, %arg11: memref<1x4x8xf32, #tpu.memory_space<vmem>>) attributes {dimension_semantics = [#tpu.dimension_semantics<parallel>], iteration_bounds = array<i64: 2>, scalar_prefetch = 0 : i64, scratch_operands = 0 : i64, tpu.core_type = #tpu.core_type<tc>, window_params = [{transform_indices = @transform_0, window_bounds = array<i64: 1, 1, 32>}, {transform_indices = @transform_1, window_bounds = array<i64: 1, 8, 32>}, {pipeline_mode = #tpu.pipeline_mode<synchronous>, transform_indices = @transform_2, window_bounds = array<i64: 32, 32>}, {pipeline_mode = #tpu.pipeline_mode<synchronous>, transform_indices = @transform_3, window_bounds = array<i64: 1, 32>}, {pipeline_mode = #tpu.pipeline_mode<synchronous>, transform_indices = @transform_4, window_bounds = array<i64: 32, 32>}, {pipeline_mode = #tpu.pipeline_mode<synchronous>, transform_indices = @transform_5, window_bounds = array<i64: 1, 32>}, {pipeline_mode = #tpu.pipeline_mode<synchronous>, transform_indices = @transform_6, window_bounds = array<i64: 4, 32>}, {pipeline_mode = #tpu.pipeline_mode<synchronous>, transform_indices = @transform_7, window_bounds = array<i64: 4, 32>}, {transform_indices = @transform_8, window_bounds = array<i64: 1, 1, 8>}, {transform_indices = @transform_9, window_bounds = array<i64: 1, 1, 32>}, {transform_indices = @transform_10, window_bounds = array<i64: 1, 4, 8>}]} {
    %c0 = arith.constant 0 : index
    %c0_0 = arith.constant 0 : index
    %c0_1 = arith.constant 0 : index
    %0 = vector.load %arg2[%c0, %c0_0, %c0_1] : memref<1x8x32xf32, #tpu.memory_space<vmem>>, vector<1x8x32xf32>
    %1 = vector.shape_cast %0 : vector<1x8x32xf32> to vector<8x32xf32>
    %c0_2 = arith.constant 0 : index
    %c0_3 = arith.constant 0 : index
    %2 = vector.load %arg3[%c0_2, %c0_3] : memref<32x32xf32, #tpu.memory_space<vmem>>, vector<32x32xf32>
    %cst = arith.constant dense<0.000000e+00> : vector<8x32xf32>
    %3 = tpu.matmul %1, %2, %cst {dimension_numbers = #tpu.dot_dimension_numbers<[1], [0], [0], [1], [0, 0, 1, 1], [], []>} : vector<8x32xf32>, vector<32x32xf32>, vector<8x32xf32> -> vector<8x32xf32>
    %c0_4 = arith.constant 0 : index
    %c0_5 = arith.constant 0 : index
    %4 = vector.load %arg4[%c0_4, %c0_5] : memref<1x32xf32, #tpu.memory_space<vmem>>, vector<1x32xf32>
    %5 = vector.broadcast %4 : vector<1x32xf32> to vector<8x32xf32>
    %6 = arith.addf %3, %5 : vector<8x32xf32>
    %c0_6 = arith.constant 0 : index
    %c0_7 = arith.constant 0 : index
    %7 = vector.load %arg5[%c0_6, %c0_7] : memref<32x32xf32, #tpu.memory_space<vmem>>, vector<32x32xf32>
    %cst_8 = arith.constant dense<0.000000e+00> : vector<8x32xf32>
    %8 = tpu.matmul %1, %7, %cst_8 {dimension_numbers = #tpu.dot_dimension_numbers<[1], [0], [0], [1], [0, 0, 1, 1], [], []>} : vector<8x32xf32>, vector<32x32xf32>, vector<8x32xf32> -> vector<8x32xf32>
    %c0_9 = arith.constant 0 : index
    %c0_10 = arith.constant 0 : index
    %9 = vector.load %arg6[%c0_9, %c0_10] : memref<1x32xf32, #tpu.memory_space<vmem>>, vector<1x32xf32>
    %10 = vector.broadcast %9 : vector<1x32xf32> to vector<8x32xf32>
    %11 = arith.addf %8, %10 : vector<8x32xf32>
    %12 = vector.shape_cast %6 : vector<8x32xf32> to vector<1x8x32xf32>
    %13 = vector.shape_cast %11 : vector<8x32xf32> to vector<1x8x32xf32>
    %c0_11 = arith.constant 0 : index
    %c0_12 = arith.constant 0 : index
    %c0_13 = arith.constant 0 : index
    %14 = vector.load %arg1[%c0_11, %c0_12, %c0_13] : memref<1x1x32xf32, #tpu.memory_space<vmem>>, vector<1x1x32xf32>
    %c0_14 = arith.constant 0 : index
    %c0_15 = arith.constant 0 : index
    %15 = vector.load %arg7[%c0_14, %c0_15] : memref<4x32xf32, #tpu.memory_space<vmem>>, vector<4x32xf32>
    %16 = vector.shape_cast %15 : vector<4x32xf32> to vector<1x4x32xf32>
    %17 = vector.broadcast %14 : vector<1x1x32xf32> to vector<1x4x32xf32>
    %18 = arith.mulf %17, %16 : vector<1x4x32xf32>
    "tpu.trace_start"() <{level = 10 : i32, message = "bhk,bsk->bhs"}> : () -> ()
    %cst_16 = arith.constant dense<0.000000e+00> : vector<1x4x8xf32>
    %19 = tpu.matmul %18, %12, %cst_16 {dimension_numbers = #tpu.dot_dimension_numbers<[2], [2], [1], [1], [0, 0, 0, 1, 1, 1], [0], [0]>} : vector<1x4x32xf32>, vector<1x8x32xf32>, vector<1x4x8xf32> -> vector<1x4x8xf32>
    "tpu.trace_stop"() : () -> ()
    %c0_17 = arith.constant 0 : index
    %c0_18 = arith.constant 0 : index
    %c0_19 = arith.constant 0 : index
    %20 = vector.load %arg9[%c0_17, %c0_18, %c0_19] : memref<1x1x8xf32, #tpu.memory_space<vmem>>, vector<1x1x8xf32>
    %21 = vector.broadcast %20 : vector<1x1x8xf32> to vector<1x4x8xf32>
    %22 = arith.addf %19, %21 : vector<1x4x8xf32>
    %cst_20 = arith.constant dense<0xFF800000> : vector<1x4xf32>
    %23 = vector.multi_reduction <maximumf>, %22, %cst_20 [2] : vector<1x4x8xf32> to vector<1x4xf32>
    %24 = vector.shape_cast %23 : vector<1x4xf32> to vector<1x4x1xf32>
    %25 = vector.broadcast %24 : vector<1x4x1xf32> to vector<1x4x8xf32>
    %26 = arith.subf %22, %25 : vector<1x4x8xf32>
    %27 = math.exp %26 : vector<1x4x8xf32>
    %cst_21 = arith.constant dense<0.000000e+00> : vector<1x4xf32>
    %28 = vector.multi_reduction <add>, %27, %cst_21 [2] : vector<1x4x8xf32> to vector<1x4xf32>
    %29 = vector.shape_cast %28 : vector<1x4xf32> to vector<1x4x1xf32>
    %30 = vector.broadcast %29 : vector<1x4x1xf32> to vector<1x4x8xf32>
    %31 = arith.divf %27, %30 : vector<1x4x8xf32>
    %c0_22 = arith.constant 0 : index
    %c0_23 = arith.constant 0 : index
    %c0_24 = arith.constant 0 : index
    %32 = vector.load %arg11[%c0_22, %c0_23, %c0_24] : memref<1x4x8xf32, #tpu.memory_space<vmem>>, vector<1x4x8xf32>
    tpu.vector_store %arg11[%c0_22, %c0_23, %c0_24], %31 {strides = array<i32>} : memref<1x4x8xf32, #tpu.memory_space<vmem>>, vector<1x4x8xf32>,
    "tpu.trace_start"() <{level = 10 : i32, message = "bhs,bsv->bhv"}> : () -> ()
    %cst_25 = arith.constant dense<0.000000e+00> : vector<1x4x32xf32>
    %33 = tpu.matmul %31, %13, %cst_25 {dimension_numbers = #tpu.dot_dimension_numbers<[2], [1], [1], [2], [0, 0, 0, 1, 1, 2], [0], [0]>} : vector<1x4x8xf32>, vector<1x8x32xf32>, vector<1x4x32xf32> -> vector<1x4x32xf32>
    "tpu.trace_stop"() : () -> ()
    %c0_26 = arith.constant 0 : index
    %c0_27 = arith.constant 0 : index
    %34 = vector.load %arg8[%c0_26, %c0_27] : memref<4x32xf32, #tpu.memory_space<vmem>>, vector<4x32xf32>
    %35 = vector.shape_cast %34 : vector<4x32xf32> to vector<1x4x32xf32>
    %36 = arith.mulf %33, %35 : vector<1x4x32xf32>
    %cst_28 = arith.constant dense<0.000000e+00> : vector<1x32xf32>
    %37 = vector.multi_reduction <add>, %36, %cst_28 [1] : vector<1x4x32xf32> to vector<1x32xf32>
    %38 = vector.shape_cast %37 : vector<1x32xf32> to vector<1x1x32xf32>
    %c0_29 = arith.constant 0 : index
    %c0_30 = arith.constant 0 : index
    %c0_31 = arith.constant 0 : index
    %39 = vector.load %arg10[%c0_29, %c0_30, %c0_31] : memref<1x1x32xf32, #tpu.memory_space<vmem>>, vector<1x1x32xf32>
    tpu.vector_store %arg10[%c0_29, %c0_30, %c0_31], %38 {strides = array<i32>} : memref<1x1x32xf32, #tpu.memory_space<vmem>>, vector<1x1x32xf32>,
    return
  }
  func.func @transform_0(%arg0: i32) -> (i32, i32, i32) {
    %c0_i32 = arith.constant 0 : i32
    %c0_i32_0 = arith.constant 0 : i32
    %c0_i32_1 = arith.constant 0 : i32
    return %arg0, %c0_i32, %c0_i32_0 : i32, i32, i32
  }
  func.func @transform_1(%arg0: i32) -> (i32, i32, i32) {
    %c0_i32 = arith.constant 0 : i32
    %c0_i32_0 = arith.constant 0 : i32
    %c0_i32_1 = arith.constant 0 : i32
    return %arg0, %c0_i32, %c0_i32_0 : i32, i32, i32
  }
  func.func @transform_2(%arg0: i32) -> (i32, i32) {
    %c0_i32 = arith.constant 0 : i32
    %c0_i32_0 = arith.constant 0 : i32
    %c0_i32_1 = arith.constant 0 : i32
    return %c0_i32, %c0_i32_0 : i32, i32
  }
  func.func @transform_3(%arg0: i32) -> (i32, i32) {
    %c0_i32 = arith.constant 0 : i32
    %c0_i32_0 = arith.constant 0 : i32
    %c0_i32_1 = arith.constant 0 : i32
    return %c0_i32, %c0_i32_0 : i32, i32
  }
  func.func @transform_4(%arg0: i32) -> (i32, i32) {
    %c0_i32 = arith.constant 0 : i32
    %c0_i32_0 = arith.constant 0 : i32
    %c0_i32_1 = arith.constant 0 : i32
    return %c0_i32, %c0_i32_0 : i32, i32
  }
  func.func @transform_5(%arg0: i32) -> (i32, i32) {
    %c0_i32 = arith.constant 0 : i32
    %c0_i32_0 = arith.constant 0 : i32
    %c0_i32_1 = arith.constant 0 : i32
    return %c0_i32, %c0_i32_0 : i32, i32
  }
  func.func @transform_6(%arg0: i32) -> (i32, i32) {
    %c0_i32 = arith.constant 0 : i32
    %c0_i32_0 = arith.constant 0 : i32
    %c0_i32_1 = arith.constant 0 : i32
    return %c0_i32, %c0_i32_0 : i32, i32
  }
  func.func @transform_7(%arg0: i32) -> (i32, i32) {
    %c0_i32 = arith.constant 0 : i32
    %c0_i32_0 = arith.constant 0 : i32
    %c0_i32_1 = arith.constant 0 : i32
    return %c0_i32, %c0_i32_0 : i32, i32
  }
  func.func @transform_8(%arg0: i32) -> (i32, i32, i32) {
    %c0_i32 = arith.constant 0 : i32
    %c0_i32_0 = arith.constant 0 : i32
    %c0_i32_1 = arith.constant 0 : i32
    return %arg0, %c0_i32, %c0_i32_0 : i32, i32, i32
  }
  func.func @transform_9(%arg0: i32) -> (i32, i32, i32) {
    %c0_i32 = arith.constant 0 : i32
    %c0_i32_0 = arith.constant 0 : i32
    %c0_i32_1 = arith.constant 0 : i32
    return %arg0, %c0_i32, %c0_i32_0 : i32, i32, i32
  }
  func.func @transform_10(%arg0: i32) -> (i32, i32, i32) {
    %c0_i32 = arith.constant 0 : i32
    %c0_i32_0 = arith.constant 0 : i32
    %c0_i32_1 = arith.constant 0 : i32
    return %arg0, %c0_i32, %c0_i32_0 : i32, i32, i32
  }
}

</mosaic_0001>

<bundles_post_ra>
// kernel: tpu_custom_call.1
= control target key start
LH: loop header
LB: loop body
LE: loop exit
PB: predicated region body
PF: predicated region fallthrough
CT: control target
= control target key end

     0   :  { %s1644_s0 = inlined_call_operand.hbm [shape: f32[2,1,32], index: 0, kind: input, shape index: {}]   ;;  %s1645_s1 = inlined_call_operand.hbm [shape: f32[2,8,32], index: 1, kind: input, shape index: {}]   ;;  %s1646_s2 = inlined_call_operand.hbm [shape: f32[32,32], index: 2, kind: input, shape index: {}]   ;;  %s1647_s3 = inlined_call_operand.hbm [shape: f32[1,32], index: 3, kind: input, shape index: {}]   ;;  %s1648_s4 = inlined_call_operand.hbm [shape: f32[32,32], index: 4, kind: input, shape index: {}]   ;;  %s1649_s5 = inlined_call_operand.hbm [shape: f32[1,32], index: 5, kind: input, shape index: {}]   ;;  %s1650_s6 = inlined_call_operand.vmem [shape: f32[4,32], index: 6, kind: input, shape index: {}]   ;;  %s1651_s7 = inlined_call_operand.hbm [shape: f32[4,32], index: 7, kind: input, shape index: {}]   ;;  %s1652_s8 = inlined_call_operand.vmem [shape: f32[2,1,8], index: 8, kind: input, shape index: {}]   ;;  %s1653_s9 = inlined_call_operand.hbm [shape: f32[2,1,32], index: 9, kind: output, shape index: {0}]   ;;  %s1654_s10 = inlined_call_operand.hbm [shape: f32[2,4,8], index: 10, kind: output, shape index: {1}]  }
   0x1   :  { %1659 = sst [smem:[#allocation28_spill]] %s1646_s2 }
   0x2   :  { %1660 = sst [smem:[#allocation29_spill]] %s1647_s3 }
   0x3   :  { %1661 = sst [smem:[#allocation30_spill]] %s1648_s4 }
   0x4   :  { %1662 = sst [smem:[#allocation31_spill]] %s1649_s5 }
   0x5   :  { %1663 = sst [smem:[#allocation32_spill]] %s1651_s7 }
   0x6   :  { %16 = vsyncpa [#allocation3], 0 }
   0x7   :  { %18 = vsyncpa [#allocation3 + $0x1], 0 }
   0x8   :  { %19 = vsyncpa [#allocation6], 0 }
   0x9   :  { %21 = vsyncpa [#allocation6 + $0x1], 0 }
   0xa   :  { %22 = vsyncpa [#allocation9], 0 }
   0xb   :  { %23 = vsyncpa [#allocation12], 0 }
   0xc   :  { %24 = vsyncpa [#allocation4], 0 }
   0xd   :  { %26 = vsyncpa [#allocation4 + $0x1], 0 }
   0xe   :  { %27 = vsyncpa [#allocation16], 0 }
   0xf   :  { %29 = vsyncpa [#allocation16 + $0x1], 0  ;;  %s1409_s13 = smov 0   ;;  %s1411_s14 = smov 0  }
  0x10   :  { %s1413_s15 = smov 0   ;;  %s1415_s16 = smov 0  }
  0x11 LB: > { %1664 = sst [smem:[#allocation24_spill]] %s1341_s15  ;;  %s1433_s20 = sadd.s32 4294967295, %s1345_s16   ;;  %s1345_s16 = sphi %s1415_s16, %s1682_s16   ;;  %s1341_s15 = sphi %s1413_s15, %s1684_s15   ;;  %s1337_s14 = sphi %s1411_s14, %s1686_s14   ;;  %s1333_s13 = sphi %s1409_s13, %s1685_s13  }
  0x12   : > { %s1665_s2 = sld [smem:[#allocation28_spill]]  ;;  %p878_p0 = scmp.ge.s32.totalorder %s1345_s16, 1 }
  0x13   : > { %p56_p1 = scmp.eq.s32.totalorder %s1433_s20, 0  ;;  %p296_p2 = scmp.lt.s32.totalorder %s1345_s16, 3 }
  0x14   : > { %s1347_s22 = smov [#allocation7]   ;;  %s1667_s3 = sld [smem:[#allocation29_spill]] }
  0x15   : > { %p1438_p3 = pnand %p878_p0, %p296_p2  ;;  %s309_s23 = sshll.u32 %s1347_s22, 4  ;;  %s310_s23 = int_to_ptr.vmem [resolvable:$true] %s309_s23 }
  0x16   : > { %s1669_s5 = sld [smem:[#allocation31_spill]]  ;;  %s1348_s11 = smov [#allocation8]  }
  0x17   : > { %p932_p4 = pneg %p1438_p3  ;;  %s324_s12 = sshll.u32 %s1348_s11, 4  ;;  %s325_s12 = int_to_ptr.vmem [resolvable:$true] %s324_s12 }
  0x18   : > { %s307_s19 = sshll.u32 %s1665_s2, 4  ;;  %s1349_s17 = smov 128   ;;  %s308_s19 = int_to_ptr.hbm [resolvable:$true] %s307_s19 }
  0x19   : > { %p1450_p6 = pnand %p932_p4, %p56_p1  ;;  %s1350_s18 = smov 8  }
  0x1a   : > { %s322_s26 = sshll.u32 %s1667_s3, 4  ;;  %s1670_s4 = sld [smem:[#allocation30_spill]]  ;;  %s323_s26 = int_to_ptr.hbm [resolvable:$true] %s322_s26 }
  0x1b   : > { %935 = dma.hbm_to_vmem [thread:$0]  (!%p1450_p6), %s308_s19, 512, %s310_s23, [#allocation6], %s1349_s17, %s1349_s17, %s1350_s18  }
  0x1c   : > { %s348_s30 = sshll.u32 %s1669_s5, 4  ;;  %s1351_s2 = smov [#allocation11]   ;;  %s349_s30 = int_to_ptr.hbm [resolvable:$true] %s348_s30 }
  0x1d   : > { %938 = dma.hbm_to_vmem [thread:$0]  (!%p1450_p6), %s323_s26, 16, %s325_s12, [#allocation9]  }
  0x1e   : > { %s350_s28 = sshll.u32 %s1351_s2, 4  ;;  %s1352_s19 = smov [#allocation10]   ;;  %s351_s28 = int_to_ptr.vmem [resolvable:$true] %s350_s28 }
  0x1f   : > { %944 = dma.hbm_to_vmem [thread:$0]  (!%p1450_p6), %s349_s30, 16, %s351_s28, [#allocation12]  }
  0x20   : > { %s333_s25 = sshll.u32 %s1670_s4, 4  ;;  %s335_s23 = sshll.u32 %s1352_s19, 4  ;;  %s334_s25 = int_to_ptr.hbm [resolvable:$true] %s333_s25  ;;  %s336_s23 = int_to_ptr.vmem [resolvable:$true] %s335_s23 }
  0x21   : > { %s1671_s7 = sld [smem:[#allocation32_spill]]  ;;  %s1353_s2 = smov [#allocation13]  }
  0x22   : > { %941 = dma.hbm_to_vmem [thread:$0]  (!%p1450_p6), %s334_s25, 512, %s336_s23, [#allocation9], %s1349_s17, %s1349_s17, %s1350_s18  }
  0x23   : > { %s365_s12 = sshll.u32 %s1353_s2, 4  ;;  %s877_s30 = sadd.s32 4294967294, %s1345_s16   ;;  %s366_s12 = int_to_ptr.vmem [resolvable:$true] %s365_s12 }
  0x24   : > { %s1475_s22 = sadd.s32 1, %s1345_s16   ;;  %s42_s24 = sadd.s32 1, %s1341_s15 }
  0x25   : > { %1672 = sst [smem:[#allocation25_spill]] %s1475_s22  ;;  %s39_s28 = ssub.s32 %s1345_s16, %s1475_s22 }
  0x26   : > { %p49_p7 = scmp.ne.s32.totalorder %s1341_s15, %s1337_s14  ;;  %p40_p8 = scmp.eq.s32.totalorder %s39_s28, 0 }
  0x27   : > { %s363_s11 = sshll.u32 %s1671_s7, 4  ;;  %p50_p9 = scmp.eq.s32.totalorder %s1345_s16, 0  ;;  %s364_s11 = int_to_ptr.hbm [resolvable:$true] %s363_s11 }
  0x28   : > { %947 = dma.hbm_to_vmem [thread:$0]  (!%p1450_p6), %s364_s11, 64, %s366_s12, [#allocation12]  }
  0x29   : > { %p55_p10 = scmp.ne.s32.totalorder %s1337_s14, %s1333_s13  ;;  %p257_p11 = scmp.eq.s32.totalorder %s1433_s20, 1 }
  0x2a   : > { %s1487_s17 = scalar_select %p40_p8, %s1341_s15, %s42_s24  }
  0x2b   : > { %p1489_p12 = por %p50_p9, %p49_p7  ;;  %p1495_p13 = por %p56_p1, %p55_p10 }
  0x2c   : > { %1673 = sst [smem:[#allocation26_spill]] %s1487_s17  ;;  %p1499_p0 = por %p257_p11, %p49_p7 }
  0x2d   : > { %p263_p2 = scmp.eq.s32.totalorder %s877_s30, 1  ;;  %p967_p4 = scmp.lt.s32.totalorder %s1345_s16, 2 }
  0x2e   : > { %s376_s19 = sand.u32 1, %s1341_s15   ;;  %s382_s11 = scalar_lea.hbm %s1644_s0, %s1345_s16 }
  0x2f   : > { %p1505_p6 = por %p263_p2, %p55_p10  ;;  %s384_s2 = sshll.u32 %s382_s11, 4  ;;  %s385_s2 = int_to_ptr.hbm [resolvable:$true] %s384_s2 }
  0x30   : > { %s379_s12 = scalar_lea.vmem [#allocation2], %s376_s19  ;;  %p1515_p7 = pnand %p967_p4, %p1489_p12 }
  0x31   : > { %s1677_s23 = scalar_select %p1505_p6, 1, 0 }
  0x32   : > { %s386_s24 = sshll.u32 %s379_s12, 4  ;;  %s393_s30 = sand.u32 1, %s1345_s16   ;;  %s387_s24 = int_to_ptr.vmem [resolvable:$true] %s386_s24 }
  0x33   : > { %1678 = sst [smem:[#allocation27_spill]] %s1677_s23  ;;  %s885_s3 = sshll.u32 %s376_s19, 3 }
  0x34   : > { %s377_s4 = scalar_lea.sflag [#allocation3], %s376_s19  ;;  %s1171_s5 = sshra.s32 %s385_s2, 4  ;;  %s1172_s5 = int_to_ptr.hbm [resolvable:$true] %s1171_s5 }
  0x35   : > { %s1173_s7 = scalar_lea.hbm %s1172_s5, 1  ;;  %p1175_p9 = pneg %p1515_p7 }
  0x36   : > { %p1174_p8 = scmp.ne.s32.totalorder %s1172_s5, %s1173_s7  ;;  %s1178_s29 = scalar_lea.hbm %s1644_s0, 2 }
  0x37   : > { %p1179_p12 = scmp.lt.s32.totalorder %s1172_s5, %s1644_s0  ;;  %p1180_p2 = scmp.lt.s32.totalorder %s1178_s29, %s1173_s7 }
  0x38   : > { %p1176_p10 = pnand %p1175_p9, %p1174_p8 }
  0x39   : > { %p1181_p4 = por %p1180_p2, %p1179_p12 }
  0x3a   : > { %p1177_p11 = pneg %p1176_p10 }
  0x3c   : > { %p1182_p5 = pnand %p1181_p4, %p1177_p11 }
  0x3e   : > { %1185 = shalt.err (!%p1182_p5)
}
  0x3f   : > { %951 = dma.hbm_to_vmem [thread:$0]  (!%p1515_p7), %s385_s2, 16, %s387_s24, %s377_s4  }
  0x40   : > { %s886_s19 = sshll.u32 %s1345_s16, 3  ;;  %s397_s17 = scalar_lea.vmem [#allocation5], %s885_s3 }
  0x41   : > { %s405_s15 = sshll.u32 %s397_s17, 4  ;;  %s401_s27 = scalar_lea.hbm %s1645_s1, %s886_s19  ;;  %s406_s15 = int_to_ptr.vmem [resolvable:$true] %s405_s15 }
  0x42   : > { %s403_s26 = sshll.u32 %s401_s27, 4  ;;  %s394_s5 = scalar_lea.sflag [#allocation6], %s393_s30  ;;  %s404_s26 = int_to_ptr.hbm [resolvable:$true] %s403_s26 }
  0x43   : > { %s1201_s7 = sshra.s32 %s404_s26, 4  ;;  %s1208_s3 = scalar_lea.hbm %s1645_s1, 16  ;;  %s1202_s7 = int_to_ptr.hbm [resolvable:$true] %s1201_s7 }
  0x44   : > { %s1203_s29 = scalar_lea.hbm %s1202_s7, 8  ;;  %p1209_p11 = scmp.lt.s32.totalorder %s1202_s7, %s1645_s1 }
  0x45   : > { %p1204_p5 = scmp.ne.s32.totalorder %s1202_s7, %s1203_s29  ;;  %p1210_p12 = scmp.lt.s32.totalorder %s1208_s3, %s1203_s29 }
  0x47   : > { %p1206_p8 = pnand %p1204_p5, %p1175_p9  ;;  %p1211_p2 = por %p1210_p12, %p1209_p11 }
  0x49   : > { %p1207_p10 = pneg %p1206_p8 }
  0x4b   : > { %p1212_p4 = pnand %p1211_p2, %p1207_p10 }
  0x4d   : > { %1215 = shalt.err (!%p1212_p4)
}
  0x4e   : > { %954 = dma.hbm_to_vmem [thread:$0]  (!%p1515_p7), %s404_s26, 128, %s406_s15, %s394_s5  }
  0x4f   : > { %420 = sbr.rel (%p1438_p3) target bundleno = 781 (0x30d), region = 56  ;;  %s1551_s22 = sand.u32 (!%p1438_p3), 1, %s1337_s14  }
  0x50   : > { %s423_s23 = scalar_lea.sflag (!%p1438_p3), [#allocation3], %s1551_s22  ;;  %s425_s30 = scalar_lea.vmem (!%p1438_p3), [#allocation2], %s1551_s22 }
  0x54   : > { %1304 = dma.done.wait (%p1495_p13), %s423_s23, 16  }
  0x55   : > { %1306 = vsyncadd (%p1495_p13), %s423_s23, 4294967280  ;;  %s431_s15 = sand.u32 1, %s1433_s20   ;;  %s888_s28 = sshll.u32 %s1551_s22, 3 }
  0x56   : > { %s432_s21 = scalar_lea.sflag [#allocation6], %s431_s15  ;;  %s435_s11 = scalar_lea.vmem [#allocation5], %s888_s28 }
  0x57   : > { %1308 = dma.done.wait (%p1495_p13), %s432_s21, 128  }
  0x58   : > { %1310 = vsyncadd (%p1495_p13), %s432_s21, 4294967168 }
  0x59   : > { %1312 = dma.done.wait (%p56_p1), [#allocation6], 512  }
  0x5a   : > { %1314 = vsyncadd (%p56_p1), [#allocation6], 4294966784 }
  0x5b   : > { %1316 = dma.done.wait (%p56_p1), [#allocation9], 528  }
  0x5c   : > { %1318 = vsyncadd (%p56_p1), [#allocation9], 4294966768 }
  0x5d   : > { %1320 = dma.done.wait (%p56_p1), [#allocation12], 80  }
  0x5e   : > { %1322 = vsyncadd (%p56_p1), [#allocation12], 4294967216  ;;  %v516_v0 = vld [vmem:[#allocation7 + $0x18] sm:$0xff]  ;;  %v515_v1 = vld [vmem:[#allocation7 + $0x10] sm:$0xff]  ;;  %vm521_vm0 = vcmask 261120   ;;  %p509_p3 = scmp.lt.s32.totalorder %s1433_s20, 1 }
  0x5f   : > { %537 = vmatpush.msra.mxu0 %v516_v0  ;;  %v514_v2 = vld [vmem:[#allocation7 + $0x8] sm:$0xff]  ;;  %v513_v3 = vld [vmem:[#allocation7] sm:$0xff]  ;;  %v512_v4 = vld [vmem:[%s435_s11] sm:$0xff]  ;;  %vm609_vm1 = vcmask 60416   ;;  %s894_s7 = sshll.u32 %s1551_s22, 2  ;;  %vm635_vm6 = vcmask 64512  }
  0x60   : > { %s510_s18 = scalar_select %p509_p3, %s1433_s20, 1  ;;  %v1013_v5 = vld [vmem:[#allocation8] ss:$0 sm:$0xff]  ;;  %v1014_v6 = vld [vmem:[%s425_s30] ss:$0 sm:$0xff]  ;;  %v547_v16 = vld [vmem:[#allocation10 + $0x10] sm:$0xff] }
  0x61   : > { %538 = vmatpush.msra.mxu0 %v515_v1  ;;  %v574_v7 = vld [vmem:[%s1650_s6] sm:$0xf]  ;;  %v548_v15 = vld [vmem:[#allocation10 + $0x18] sm:$0xff]  ;;  %v545_v18 = vld [vmem:[#allocation10] sm:$0xff]  ;;  %s508_s29 = scalar_lea.vmem [#allocation15], %s894_s7  ;;  %s901_s4 = sshll.u32 %s1433_s20, 2 }
  0x62   : > { %s511_s27 = scalar_lea.vmem %s1652_s8, %s510_s18  ;;  %v578_v10 = vmul.f32 %v1014_v6, %v574_v7  ;;  %565 = vmatpush.msra.mxu1 %v548_v15  ;;  %v546_v17 = vld [vmem:[#allocation10 + $0x8] sm:$0xff]  ;;  %v1016_v24 = vld [vmem:[#allocation11] ss:$0 sm:$0xff]  ;;  %s699_s17 = scalar_lea.hbm %s1654_s10, %s901_s4 }
  0x63   : > { %539 = vmatpush.msra.mxu0 %v514_v2  ;;  %v1015_v11 = vld [vmem:[%s511_s27] ss:$0 sm:$0xff]  ;;  %s701_s24 = sshll.u32 %s508_s29, 4  ;;  %s703_s23 = sshll.u32 %s699_s17, 4  ;;  %s702_s24 = int_to_ptr.vmem [resolvable:$true] %s701_s24  ;;  %s704_s23 = int_to_ptr.hbm [resolvable:$true] %s703_s23 }
  0x64   : > { %566 = vmatpush.msra.mxu1 %v547_v16  ;;  %s676_s30 = scalar_lea.sflag [#allocation16], %s1551_s22  ;;  %s1245_s15 = sshra.s32 %s704_s23, 4  ;;  %s1246_s15 = int_to_ptr.hbm [resolvable:$true] %s1245_s15 }
  0x65   : > { %540 = vmatpush.msra.mxu0 %v513_v3  ;;  %s1247_s28 = scalar_lea.hbm %s1246_s15, 4  ;;  %s1251_s18 = scalar_lea.hbm %s1654_s10, 8 }
  0x66   : > { %895 = vmatmul.msk.f32.vlgmr.msra.gmra.mxu0 %vm521_vm0, %v512_v4  ;;  %567 = vmatpush.msra.mxu1 %v546_v17  ;;  %p1248_p1 = scmp.ne.s32.totalorder %s1246_s15, %s1247_s28  ;;  %p1252_p9 = scmp.lt.s32.totalorder %s1246_s15, %s1654_s10 }
  0x67   : > { %p1253_p5 = scmp.lt.s32.totalorder %s1251_s18, %s1247_s28 }
  0x68   : > { %568 = vmatpush.msra.mxu1 %v545_v18  ;;  %p1249_p13 = pnand %p1248_p1, %p1499_p0 }
  0x69   : > { %896 = vmatmul.msk.f32.vlgmr.msra.gmra.mxu1 %vm521_vm0, %v512_v4  ;;  %p1254_p8 = por %p1253_p5, %p1252_p9 }
  0x6a   : > { %p1250_p7 = pneg %p1249_p13 }
  0x6c   : > { %p1255_p10 = pnand %p1254_p8, %p1250_p7 }
  0xe3   : > { %v542_v8 = vpop.f32.mrf.mxu0 }
  0xe4   : > { %v543_v9 = vadd.f32 %v1013_v5, %v542_v8 }
  0xe6   : > { %897 = vmatpush.xpose.msk.msra.mxu2 %vm521_vm0, %v543_v9  ;;  %v570_v25 = vpop.f32.mrf.mxu1 }
  0xe7   : > { %v571_v26 = vadd.f32 %v1016_v24, %v570_v25 }
  0xe9   : > { %898 = vmatmul.msk.f32.vlgmr.msra.gmra.mxu2 %vm521_vm0, %v578_v10  ;;  %654 = vmatpush.msra.mxu3 %v571_v26 }
 0x16c   : > { %v606_v12 = vpop.f32.mrf.mxu2 }
 0x16d   : > { %v607_v13 = vadd.f32 %v1015_v11, %v606_v12 }
 0x16f   : > { %v610_v14 = vsel %vm609_vm1, %v607_v13, -inf }
 0x170   : > { %611 = vmax.xlane.f32.xlu0 %v610_v14 }
 0x1e3   : > { %v612_v19 = vpop.xlane.xlu0 %611 }
 0x1e4   : > { %v613_v20 = vsub.f32 %v607_v13, %v612_v19 }
 0x1e6   : > { %v614_v21 = vmul.f32 1.442695, %v613_v20 }
 0x1e8   : > { %1017 = vpow2.f32 %v614_v21 }
 0x1ee   : > { %v1018_v22 = vpop.eup %1017 }
 0x1ef   : > { %v616_v23 = vsel %vm609_vm1, %v1018_v22, 0.0 }
 0x1f0   : > { %617 = vadd.xlane.f32.xlu0 %v616_v23 }
 0x263   : > { %v618_v27 = vpop.xlane.xlu0 %617 }
 0x264   : > { %1019 = vrcp.f32 %v618_v27  ;;  %v630_v31 = vand.u32 2147483648, %v618_v27  ;;  %v628_v33 = vand.u32 2147483647, %v618_v27  ;;  %vm624_vm3 = vweird.f32 %v618_v27 }
 0x266   : > { %v631_v35 = vor.u32 1.1754944e-38, %v630_v31  ;;  %vm629_vm5 = vcmp.eq.f32.partialorder %v628_v33, 8.507059e+37 }
 0x26a   : > { %v1020_v28 = vpop.eup %1019 }
 0x26b   : > { %v620_v29 = vmul.f32 %v1020_v28, %v618_v27  ;;  %vm625_vm2 = vweird.f32 %v1020_v28 }
 0x26c   : > { %vm626_vm4 = vmor %vm624_vm3, %vm625_vm2 }
 0x26d   : > { %v621_v30 = vsub.f32 1.0, %v620_v29 }
 0x26f   : > { %v622_v32 = vmul.f32 %v1020_v28, %v621_v30 }
 0x271   : > { %v623_v34 = vadd.f32 %v1020_v28, %v622_v32 }
 0x273   : > { %v627_v36 = vsel %vm626_vm4, %v1020_v28, %v623_v34 }
 0x274   : > { %v632_v37 = vsel %vm629_vm5, %v631_v35, %v627_v36 }
 0x275   : > { %v633_v38 = vmul.f32 %v1018_v22, %v632_v37 }
 0x277   : > { %899 = vmatmul.msk.f32.vlgmr.msra.gmra.mxu3 %vm635_vm6, %v633_v38  ;;  %634 = vst.msk [vmem:[%s508_s29] sm:$0xf] %vm609_vm1, %v633_v38 }
 0x278   : > { %1258 = shalt.err (!%p1255_p10)
}
 0x279   : > { %929 = dma.vmem_to_hbm [thread:$0]  (%p1499_p0), %s702_s24, 64, %s704_s23, %s676_s30   ;;  %v659_v39 = vld [vmem:[#allocation13] sm:$0xf]  ;;  %vm661_vm7 = vcmask 257024   ;;  %vm669_vm8 = vcmask 253952  }
 0x27a   : > { %s685_s5 = scalar_lea.hbm %s1653_s9, %s1433_s20  ;;  %s501_s7 = scalar_lea.vmem [#allocation14], %s1551_s22 }
 0x27b   : > { %s687_s29 = sshll.u32 %s501_s7, 4  ;;  %s689_s4 = sshll.u32 %s685_s5, 4  ;;  %s688_s29 = int_to_ptr.vmem [resolvable:$true] %s687_s29  ;;  %s690_s4 = int_to_ptr.hbm [resolvable:$true] %s689_s4 }
 0x27c   : > { %s672_s2 = scalar_lea.sflag [#allocation4], %s1551_s22  ;;  %s1273_s3 = sshra.s32 %s690_s4, 4  ;;  %s1274_s3 = int_to_ptr.hbm [resolvable:$true] %s1273_s3 }
 0x27d   : > { %s1275_s17 = scalar_lea.hbm %s1274_s3, 1  ;;  %s1279_s23 = scalar_lea.hbm %s1653_s9, 2 }
 0x27e   : > { %p1276_p11 = scmp.ne.s32.totalorder %s1274_s3, %s1275_s17  ;;  %p1280_p4 = scmp.lt.s32.totalorder %s1274_s3, %s1653_s9 }
 0x27f   : > { %p1281_p3 = scmp.lt.s32.totalorder %s1279_s23, %s1275_s17 }
 0x280   : > { %p1277_p12 = pnand %p1276_p11, %p1499_p0 }
 0x281   : > { %p1282_p1 = por %p1281_p3, %p1280_p4 }
 0x282   : > { %p1278_p2 = pneg %p1277_p12 }
 0x284   : > { %p1283_p13 = pnand %p1282_p1, %p1278_p2 }
 0x2fa   : > { %v656_v40 = vpop.f32.mrf.mxu3 }
 0x2fb   : > { %v660_v41 = vmul.f32 %v659_v39, %v656_v40 }
 0x2fd   : > { %v662_v42 = vsel %vm661_vm7, %v660_v41, 0.0 }
 0x2fe   : > { %v663_v43 = vrot.slane %v662_v42, 4 }
 0x300   : > { %v664_v44 = vadd.f32 %v663_v43, %v662_v42 }
 0x302   : > { %v665_v45 = vrot.slane %v664_v44, 2 }
 0x304   : > { %v666_v46 = vadd.f32 %v665_v45, %v664_v44 }
 0x306   : > { %v667_v47 = vrot.slane %v666_v46, 1 }
 0x308   : > { %v668_v48 = vadd.f32 %v667_v47, %v666_v46 }
 0x30a   : > { %670 = vst.msk [vmem:[%s501_s7] sm:$0x1] %vm669_vm8, %v668_v48 }
 0x30b   : > { %1286 = shalt.err (!%p1283_p13)
}
 0x30c   : > { %928 = dma.vmem_to_hbm [thread:$0]  (%p1499_p0), %s688_s29, 16, %s690_s4, %s672_s2  }
 0x30d PF: > { %s715_s28 = sand.u32 1, %s1333_s13   ;;  %p1681_p7 = scmp.ge.s32.totalorder %s1345_s16, 2 }
 0x30e   : > { %s716_s21 = scalar_lea.sflag [#allocation4], %s715_s28 }
 0x30f   : > { %p956_p9 = pnand %p1681_p7, %p1505_p6 }
 0x311   : > { %p957_p5 = pneg %p956_p9 }
 0x313   : > { %1324 = dma.done.wait (%p957_p5), %s716_s21, 16  }
 0x314   : > { %1326 = vsyncadd (%p957_p5), %s716_s21, 4294967280  ;;  %s725_s11 = scalar_lea.sflag [#allocation16], %s715_s28 }
 0x315   : > { %1328 = dma.done.wait (%p957_p5), %s725_s11, 64  }
 0x316   : > { %1330 = vsyncadd (%p957_p5), %s725_s11, 4294967232  ;;  %s1682_s16 = sld [smem:[#allocation25_spill]]  ;;  %s1685_s13 = smov %s1337_s14 }
 0x317   : > { %s1683_s18 = sld [smem:[#allocation24_spill]] }
 0x318   : > { %s1684_s15 = sld [smem:[#allocation26_spill]] }
 0x31c   : > { %p32_p0 = scmp.ge.s32.totalorder %s1682_s16, 4  }
 0x31d   : > { %s1686_s14 = smov %s1683_s18 }
 0x31e   :  { %34 = sbr.rel (!%p32_p0) target bundleno = 17 (0x11), region = 154 }
 0x323   :  { %731 = vsyncpa [#allocation3], 1 }
 0x324   :  { %733 = vsyncpa [#allocation3 + $0x1], 1 }
 0x325   :  { %734 = vsyncpa [#allocation6], 1 }
 0x326   :  { %736 = vsyncpa [#allocation6 + $0x1], 1 }
 0x327   :  { %737 = vsyncpa [#allocation9], 1 }
 0x328   :  { %738 = vsyncpa [#allocation12], 1 }
 0x329   :  { %739 = vsyncpa [#allocation4], 1 }
 0x32a   :  { %741 = vsyncpa [#allocation4 + $0x1], 1 }
 0x32b   :  { %742 = vsyncpa [#allocation16], 1 }
 0x32c   :  { %744 = vsyncpa [#allocation16 + $0x1], 1 }

</bundles_post_ra>
